<compile_context>
chip_gen: v5e
topology: v5e:2x2
jax: 0.10.0
libtpu: 0.0.40
codegen_flags: <defaults>
</compile_context>

<pallas_src>
import functools
import math

import jax
import jax.numpy as jnp
from jax.experimental import pallas as pl
from jax.experimental.pallas import tpu as pltpu


# ----------------------------------------------------------------------------
# small helpers
# ----------------------------------------------------------------------------
def _round_up(n, m):
    return ((n + m - 1) // m) * m


def _tpu_generation():
    """Best-effort TPU generation from device_kind (0 if unknown)."""
    try:
        kind = jax.devices()[0].device_kind.lower()
    except Exception:
        return 0
    for g in (7, 6, 5, 4, 3, 2):
        if "v%d" % g in kind:
            return g
    return 0


def _vmem_capacity_bytes():
    """Physical VMEM per TensorCore (generation-aware fallback)."""
    try:
        cap = int(pltpu.get_tpu_info().vmem_capacity_bytes)
        if cap > 0:
            return cap
    except Exception:
        pass
    return (64 << 20) if _tpu_generation() >= 7 else (128 << 20)


def _pad_dim(n, prefer_256):
    """Lane-dense padding: 128-multiple; prefer 256 on v6e/v7x if cheap."""
    p128 = _round_up(n, 128)
    if prefer_256:
        p256 = _round_up(n, 256)
        if p256 == p128 or (p256 - n) * 8 <= n:   # <= ~12.5% extra padding
            return p256
    return p128


def _working_set_bytes(tm, th, Cp, bpe, ew_bpe, out_bpe, resident, wbufs=2):
    """Approximate per-step VMEM working set (pipeline buffers + temps)."""
    weights = wbufs * 3 * Cp * th * bpe            # W1, W2 cols + W3 rows
    biases = 2 * 8 * (2 * th + Cp) * 4             # sublane-padded bias tiles
    x_io = 2 * tm * Cp * bpe
    mask_io = 2 * tm * 128 * 4                     # (tm, 1) pads to 128 lanes
    out_io = 2 * tm * Cp * out_bpe
    acc = 0 if resident else tm * Cp * 4
    temps = 4 * tm * th * ew_bpe + 2 * tm * Cp * 4  # h1/h2/gate/h (+ slack)
    return weights + biases + x_io + mask_io + out_io + acc + temps


def _plan_tiles(M, Cp, Hp, bpe, ew_bpe, out_bpe, cap, stream_wbufs):
    """Pick (tm, th, resident) so the working set fits ~80% of VMEM."""
    budget = int(cap * 0.80)
    m_ceil = _round_up(max(M, 1), 8)

    def clamp(t):
        return min(_round_up(t, 8), m_ceil)

    # 1) resident weights (th == Hp): biggest row tile that fits.
    tried = set()
    for tm in (512, 256, 128, 64, 32, 16, 8):
        tm_c = clamp(tm)
        if tm_c in tried:
            continue
        tried.add(tm_c)
        if _working_set_bytes(tm_c, Hp, Cp, bpe, ew_bpe, out_bpe, True) <= budget:
            return tm_c, Hp, True

    # 2) streamed hidden chunks.  Weights are re-fetched per row tile, so this
    #    path is HBM/DMA-bound — amortize by using the largest row tile.
    tried = set()
    for tm in (1024, 512, 256, 128, 64, 32, 16, 8):
        tm_c = clamp(tm)
        if tm_c in tried:
            continue
        tried.add(tm_c)
        cand = Hp
        while cand >= 128:
            if Hp % cand == 0 and _working_set_bytes(
                    tm_c, cand, Cp, bpe, ew_bpe, out_bpe, False,
                    stream_wbufs) <= budget:
                return tm_c, cand, False
            cand -= 128
    return clamp(8), 128 if Hp % 128 == 0 else Hp, False


# ----------------------------------------------------------------------------
# parameter preparation (call once at load time; removes a per-call weight pass)
# ----------------------------------------------------------------------------
def prepare_params(params, *, compute_dtype=jnp.bfloat16, elementwise_dtype=None):
    """Pad weights to lane-dense shapes and cast once.

    Weights are stored already transposed: shape (in_features, out_features).
    """
    if isinstance(params, dict) and params.get("_prepared", False):
        return params

    C, H = params["w1"].shape
    gen = _tpu_generation()
    prefer_256 = gen >= 6                       # v6e/v7x MXU is 2x256x256
    Cp = _pad_dim(C, prefer_256)
    Hp = _pad_dim(H, prefer_256)

    if elementwise_dtype is None:
        # bf16 VPU/EUP only exist on v6e+; keep f32 on v5e / unknown / exact path.
        if (jnp.dtype(compute_dtype) == jnp.dtype(jnp.float32)) or gen < 6:
            elementwise_dtype = jnp.float32
        else:
            elementwise_dtype = jnp.bfloat16

    def pad2(a, r, c, dt):
        a = jnp.asarray(a)
        if a.shape == (r, c):
            return a.astype(dt)
        return jnp.zeros((r, c), dt).at[:a.shape[0], :a.shape[1]].set(a.astype(dt))

    return {
        "_prepared": True,
        "C": C, "H": H, "Cp": Cp, "Hp": Hp,
        "compute_dtype": compute_dtype, "ew_dtype": elementwise_dtype,
        "w1": pad2(params["w1"], Cp, Hp, compute_dtype),
        "w2": pad2(params["w2"], Cp, Hp, compute_dtype),
        "w3": pad2(params["w3"], Hp, Cp, compute_dtype),
        "b1": pad2(params["b1"], 1, Hp, elementwise_dtype),
        "b2": pad2(params["b2"], 1, Hp, elementwise_dtype),
        "b3": pad2(params["b3"], 1, Cp, jnp.float32),
    }


# ----------------------------------------------------------------------------
# kernels
# ----------------------------------------------------------------------------
def _ffn_kernel_resident(x_ref, w1_ref, b1_ref, w2_ref, b2_ref, w3_ref, b3_ref,
                         mask_ref, o_ref, *, ew_dtype):
    """All of H resident in VMEM: single pass, no accumulator scratch."""
    x = x_ref[...]                                             # (tm, Cp)

    # Gate branch: silu(x @ W1 + b1).  f32 MXU accumulation, elementwise in
    # ew_dtype (bf16 on v6e/v7x, f32 otherwise).
    h1 = jnp.dot(x, w1_ref[...], preferred_element_type=jnp.float32)
    h1 = h1.astype(ew_dtype) + b1_ref[...]
    gate = h1 * jax.nn.sigmoid(h1)                             # SiLU (EUP)

    # Value branch: x @ W2 + b2.
    h2 = jnp.dot(x, w2_ref[...], preferred_element_type=jnp.float32)
    h2 = h2.astype(ew_dtype) + b2_ref[...]

    # TODO(synk): dropout omitted (module is evaluated in inference mode).
    h = (gate * h2).astype(w3_ref.dtype)

    y = jnp.dot(h, w3_ref[...], preferred_element_type=jnp.float32)
    y = y + b3_ref[...]
    o_ref[...] = (y * mask_ref[...]).astype(o_ref.dtype)


def _ffn_kernel_streamed(x_ref, w1_ref, b1_ref, w2_ref, b2_ref, w3_ref, b3_ref,
                         mask_ref, o_ref, acc_ref, *, ew_dtype):
    """Hidden dim streamed in th-sized chunks; f32 accumulator over chunks."""
    j = pl.program_id(1)

    @pl.when(j == 0)
    def _init():
        acc_ref[...] = jnp.zeros_like(acc_ref)

    x = x_ref[...]                                             # (tm, Cp)

    h1 = jnp.dot(x, w1_ref[...], preferred_element_type=jnp.float32)
    h1 = h1.astype(ew_dtype) + b1_ref[...]
    gate = h1 * jax.nn.sigmoid(h1)

    h2 = jnp.dot(x, w2_ref[...], preferred_element_type=jnp.float32)
    h2 = h2.astype(ew_dtype) + b2_ref[...]

    h = (gate * h2).astype(w3_ref.dtype)
    acc_ref[...] += jnp.dot(h, w3_ref[...], preferred_element_type=jnp.float32)

    @pl.when(j == pl.num_programs(1) - 1)
    def _finalize():
        y = acc_ref[...] + b3_ref[...]
        o_ref[...] = (y * mask_ref[...]).astype(o_ref.dtype)


# ----------------------------------------------------------------------------
# wrapper
# ----------------------------------------------------------------------------
def feed_forward_layer(x, mask, params, *, compute_dtype=jnp.bfloat16,
                       tm=None, th=None, stream_weight_buffers=2):
    """x: (B, T, C), mask: (B, T, 1).  Returns (B, T, C) in x.dtype.

    `params` can be the raw dict from init_params (padded per call) or —
    preferably — the output of prepare_params() (padded / cast once).
    Set stream_weight_buffers=3 on v5e to hide weight-chunk DMA when the
    streamed-hidden path is used.
    """
    if not (isinstance(params, dict) and params.get("_prepared", False)):
        params = prepare_params(params, compute_dtype=compute_dtype)

    B, T, C = x.shape
    assert C == params["C"], "channel mismatch with prepared params"
    M = B * T
    Cp, Hp = params["Cp"], params["Hp"]
    cdt, edt = params["compute_dtype"], params["ew_dtype"]
    bpe = jnp.dtype(cdt).itemsize
    ew_bpe = jnp.dtype(edt).itemsize
    out_dtype = x.dtype
    out_bpe = jnp.dtype(out_dtype).itemsize

    cap = _vmem_capacity_bytes()
    wbufs = max(2, int(stream_weight_buffers))

    # ---- tile plan ----------------------------------------------------------
    tm_p, th_p, _ = _plan_tiles(M, Cp, Hp, bpe, ew_bpe, out_bpe, cap, wbufs)
    tm = tm_p if tm is None else min(_round_up(tm, 8), _round_up(max(M, 1), 8))
    th = th_p if th is None else th
    assert Hp % th == 0 and th % 128 == 0, "th must be a 128-multiple divisor of Hp"
    resident = (th == Hp)
    Mp = _round_up(M, tm)
    n_rows = Mp // tm
    n_h = Hp // th

    # ---- inputs: skip pad copies when already aligned -----------------------
    x_flat = x.reshape(M, C)
    if Mp == M and Cp == C:
        x2 = x_flat.astype(cdt)
        m2 = mask.reshape(M, 1).astype(jnp.float32)
    else:
        x2 = jnp.zeros((Mp, Cp), cdt).at[:M, :C].set(x_flat.astype(cdt))
        m2 = jnp.zeros((Mp, 1), jnp.float32).at[:M, :].set(
            mask.reshape(M, 1).astype(jnp.float32))

    # ---- generation-aware scoped VMEM limit ---------------------------------
    ws = _working_set_bytes(tm, th, Cp, bpe, ew_bpe, out_bpe, resident,
                            2 if resident else wbufs)
    vmem_bytes = min(int(cap * 7 // 8), max(32 << 20, int(1.25 * ws) + (4 << 20)))

    # ---- advisory cost (weights re-streamed per row tile when n_h > 1) ------
    C0, H0 = params["C"], params["H"]
    weight_reads = 1 if resident else n_rows
    cost = pl.CostEstimate(
        flops=6 * M * C0 * H0,
        transcendentals=M * H0,
        bytes_accessed=int(weight_reads * 3 * Cp * Hp * bpe
                           + (2 * Hp + Cp) * 4
                           + M * C0 * bpe + M * C0 * out_bpe + M * 4),
    )

    # ---- build the call ------------------------------------------------------
    if resident:
        kernel = functools.partial(_ffn_kernel_resident, ew_dtype=edt)
        grid_spec = pltpu.PrefetchScalarGridSpec(
            num_scalar_prefetch=0,
            grid=(n_rows,),
            in_specs=[
                pl.BlockSpec((tm, Cp), lambda i: (i, 0)),      # x rows
                pl.BlockSpec((Cp, Hp), lambda i: (0, 0)),      # W1 (resident)
                pl.BlockSpec((1, Hp), lambda i: (0, 0)),       # b1
                pl.BlockSpec((Cp, Hp), lambda i: (0, 0)),      # W2
                pl.BlockSpec((1, Hp), lambda i: (0, 0)),       # b2
                pl.BlockSpec((Hp, Cp), lambda i: (0, 0)),      # W3
                pl.BlockSpec((1, Cp), lambda i: (0, 0)),       # b3
                pl.BlockSpec((tm, 1), lambda i: (i, 0)),       # mask rows
            ],
            out_specs=pl.BlockSpec((tm, Cp), lambda i: (i, 0)),
        )
        dims = ("parallel",)
    else:
        kernel = functools.partial(_ffn_kernel_streamed, ew_dtype=edt)
        w_mode = pl.Buffered(wbufs) if wbufs != 2 else None

        def wspec(shape, imap):
            if w_mode is None:
                return pl.BlockSpec(shape, imap)
            return pl.BlockSpec(shape, imap, pipeline_mode=w_mode)

        grid_spec = pltpu.PrefetchScalarGridSpec(
            num_scalar_prefetch=0,
            grid=(n_rows, n_h),
            in_specs=[
                pl.BlockSpec((tm, Cp), lambda i, j: (i, 0)),   # x rows
                wspec((Cp, th), lambda i, j: (0, j)),          # W1 cols
                wspec((1, th), lambda i, j: (0, j)),           # b1
                wspec((Cp, th), lambda i, j: (0, j)),          # W2 cols
                wspec((1, th), lambda i, j: (0, j)),           # b2
                wspec((th, Cp), lambda i, j: (j, 0)),          # W3 rows
                pl.BlockSpec((1, Cp), lambda i, j: (0, 0)),    # b3
                pl.BlockSpec((tm, 1), lambda i, j: (i, 0)),    # mask rows
            ],
            out_specs=pl.BlockSpec((tm, Cp), lambda i, j: (i, 0)),
            scratch_shapes=[pltpu.VMEM((tm, Cp), jnp.float32)],
        )
        dims = ("parallel", "arbitrary")

    out = pl.pallas_call(
        kernel,
        out_shape=jax.ShapeDtypeStruct((Mp, Cp), out_dtype),
        grid_spec=grid_spec,
        compiler_params=pltpu.CompilerParams(
            dimension_semantics=dims, vmem_limit_bytes=vmem_bytes),
        cost_estimate=cost,
    )(x2, params["w1"], params["b1"], params["w2"], params["b2"],
      params["w3"], params["b3"], m2)

    if Mp != M or Cp != C:
        out = out[:M, :C]
    return out.reshape(B, T, C)


# ----------------------------------------------------------------------------
# init + pure-JAX reference
# ----------------------------------------------------------------------------
def init_params(key, channels, scale=4, dtype=jnp.float32):
    """Deterministic init mimicking nn.Linear default (kaiming-uniform-ish).

    Weights are stored already transposed: shape (in_features, out_features).
    """
    hidden = channels * scale
    keys = jax.random.split(key, 6)

    def linear(kw, kb, fan_in, fan_out):
        lim = 1.0 / math.sqrt(fan_in)
        w = jax.random.uniform(kw, (fan_in, fan_out), dtype, -lim, lim)
        b = jax.random.uniform(kb, (1, fan_out), dtype, -lim, lim)
        return w, b

    w1, b1 = linear(keys[0], keys[1], channels, hidden)
    w2, b2 = linear(keys[2], keys[3], channels, hidden)
    w3, b3 = linear(keys[4], keys[5], hidden, channels)
    return {"w1": w1, "b1": b1, "w2": w2, "b2": b2, "w3": w3, "b3": b3}


def reference(x, mask, params):
    """Pure-JAX f32 reference of the PyTorch forward (eval mode)."""
    h1 = x @ params["w1"] + params["b1"][0]
    h2 = x @ params["w2"] + params["b2"][0]
    h = (h1 * jax.nn.sigmoid(h1)) * h2
    y = h @ params["w3"] + params["b3"][0]
    return y * mask


if __name__ == "__main__":
    key = jax.random.PRNGKey(0)
    k_x, k_p, k_x2, k_p2 = jax.random.split(key, 4)

    # ---- case 1: resident-weight kernel (common path) -----------------------
    B, T, C, SCALE = 2, 8, 32, 4
    x = jax.random.normal(k_x, (B, T, C), dtype=jnp.float32)
    lengths = jnp.array([T, 5])
    mask = (jnp.arange(T)[None, :] < lengths[:, None]).astype(jnp.float32)
    mask = mask[:, :, None]
    params = init_params(k_p, C, SCALE)
    ref = reference(x, mask, params)

    # Exact path: f32 MXU operands / f32 elementwise.
    prep_f32 = prepare_params(params, compute_dtype=jnp.float32)
    out_f32 = jax.block_until_ready(feed_forward_layer(x, mask, prep_f32))
    assert out_f32.shape == (B, T, C)
    assert jnp.allclose(out_f32, ref, atol=1e-4, rtol=1e-4), "f32 mismatch"

    # Fast path: bf16 MXU operands, chip-dependent elementwise dtype.
    prep_bf16 = prepare_params(params, compute_dtype=jnp.bfloat16)
    out_bf16 = jax.block_until_ready(feed_forward_layer(x, mask, prep_bf16))
    assert out_bf16.shape == (B, T, C)
    assert jnp.allclose(out_bf16, ref, atol=5e-2, rtol=5e-2), "bf16 mismatch"

    # ---- case 2: force the streamed-hidden kernel (n_h > 1) -----------------
    C2, SCALE2 = 64, 4                     # H = 256 -> two 128-wide chunks
    x2 = jax.random.normal(k_x2, (B, T, C2), dtype=jnp.float32)
    params2 = init_params(k_p2, C2, SCALE2)
    ref2 = reference(x2, mask, params2)
    prep2 = prepare_params(params2, compute_dtype=jnp.float32)
    out2 = jax.block_until_ready(feed_forward_layer(x2, mask, prep2, th=128))
    assert out2.shape == (B, T, C2)
    assert jnp.allclose(out2, ref2, atol=1e-4, rtol=1e-4), "streamed mismatch"

    print("KERNEL_OK")
</pallas_src>

<mosaic_0001>
module attributes {stable_mosaic.version = 11 : i64} {
  func.func @_ffn_kernel_resident(%arg0: i32, %arg1: memref<16x128xf32, #tpu.memory_space<vmem>>, %arg2: memref<128x128xf32, #tpu.memory_space<vmem>>, %arg3: memref<1x128xf32, #tpu.memory_space<vmem>>, %arg4: memref<128x128xf32, #tpu.memory_space<vmem>>, %arg5: memref<1x128xf32, #tpu.memory_space<vmem>>, %arg6: memref<128x128xf32, #tpu.memory_space<vmem>>, %arg7: memref<1x128xf32, #tpu.memory_space<vmem>>, %arg8: memref<16x1xf32, #tpu.memory_space<vmem>>, %arg9: memref<16x128xf32, #tpu.memory_space<vmem>>) attributes {dimension_semantics = [#tpu.dimension_semantics<parallel>], iteration_bounds = array<i64: 1>, scalar_prefetch = 0 : i64, scratch_operands = 0 : i64, tpu.core_type = #tpu.core_type<tc>, window_params = [{transform_indices = @transform_0, window_bounds = array<i64: 16, 128>}, {pipeline_mode = #tpu.pipeline_mode<synchronous>, transform_indices = @transform_1, window_bounds = array<i64: 128, 128>}, {pipeline_mode = #tpu.pipeline_mode<synchronous>, transform_indices = @transform_2, window_bounds = array<i64: 1, 128>}, {pipeline_mode = #tpu.pipeline_mode<synchronous>, transform_indices = @transform_3, window_bounds = array<i64: 128, 128>}, {pipeline_mode = #tpu.pipeline_mode<synchronous>, transform_indices = @transform_4, window_bounds = array<i64: 1, 128>}, {pipeline_mode = #tpu.pipeline_mode<synchronous>, transform_indices = @transform_5, window_bounds = array<i64: 128, 128>}, {pipeline_mode = #tpu.pipeline_mode<synchronous>, transform_indices = @transform_6, window_bounds = array<i64: 1, 128>}, {transform_indices = @transform_7, window_bounds = array<i64: 16, 1>}, {transform_indices = @transform_8, window_bounds = array<i64: 16, 128>}]} {
    %c0 = arith.constant 0 : index
    %c0_0 = arith.constant 0 : index
    %0 = vector.load %arg1[%c0, %c0_0] : memref<16x128xf32, #tpu.memory_space<vmem>>, vector<16x128xf32>
    %c0_1 = arith.constant 0 : index
    %c0_2 = arith.constant 0 : index
    %1 = vector.load %arg2[%c0_1, %c0_2] : memref<128x128xf32, #tpu.memory_space<vmem>>, vector<128x128xf32>
    %cst = arith.constant dense<0.000000e+00> : vector<16x128xf32>
    %2 = tpu.matmul %0, %1, %cst {dimension_numbers = #tpu.dot_dimension_numbers<[1], [0], [0], [1], [0, 0, 1, 1], [], []>} : vector<16x128xf32>, vector<128x128xf32>, vector<16x128xf32> -> vector<16x128xf32>
    %c0_3 = arith.constant 0 : index
    %c0_4 = arith.constant 0 : index
    %3 = vector.load %arg3[%c0_3, %c0_4] : memref<1x128xf32, #tpu.memory_space<vmem>>, vector<1x128xf32>
    %4 = vector.broadcast %3 : vector<1x128xf32> to vector<16x128xf32>
    %5 = arith.addf %2, %4 : vector<16x128xf32>
    %6 = arith.negf %5 : vector<16x128xf32>
    %7 = math.exp %6 : vector<16x128xf32>
    %cst_5 = arith.constant 1.000000e+00 : f32
    %8 = vector.broadcast %cst_5 : f32 to vector<16x128xf32>
    %9 = arith.addf %8, %7 : vector<16x128xf32>
    %10 = arith.divf %8, %9 : vector<16x128xf32>
    %11 = arith.mulf %5, %10 : vector<16x128xf32>
    %c0_6 = arith.constant 0 : index
    %c0_7 = arith.constant 0 : index
    %12 = vector.load %arg4[%c0_6, %c0_7] : memref<128x128xf32, #tpu.memory_space<vmem>>, vector<128x128xf32>
    %cst_8 = arith.constant dense<0.000000e+00> : vector<16x128xf32>
    %13 = tpu.matmul %0, %12, %cst_8 {dimension_numbers = #tpu.dot_dimension_numbers<[1], [0], [0], [1], [0, 0, 1, 1], [], []>} : vector<16x128xf32>, vector<128x128xf32>, vector<16x128xf32> -> vector<16x128xf32>
    %c0_9 = arith.constant 0 : index
    %c0_10 = arith.constant 0 : index
    %14 = vector.load %arg5[%c0_9, %c0_10] : memref<1x128xf32, #tpu.memory_space<vmem>>, vector<1x128xf32>
    %15 = vector.broadcast %14 : vector<1x128xf32> to vector<16x128xf32>
    %16 = arith.addf %13, %15 : vector<16x128xf32>
    %17 = arith.mulf %11, %16 : vector<16x128xf32>
    %c0_11 = arith.constant 0 : index
    %c0_12 = arith.constant 0 : index
    %18 = vector.load %arg6[%c0_11, %c0_12] : memref<128x128xf32, #tpu.memory_space<vmem>>, vector<128x128xf32>
    %cst_13 = arith.constant dense<0.000000e+00> : vector<16x128xf32>
    %19 = tpu.matmul %17, %18, %cst_13 {dimension_numbers = #tpu.dot_dimension_numbers<[1], [0], [0], [1], [0, 0, 1, 1], [], []>} : vector<16x128xf32>, vector<128x128xf32>, vector<16x128xf32> -> vector<16x128xf32>
    %c0_14 = arith.constant 0 : index
    %c0_15 = arith.constant 0 : index
    %20 = vector.load %arg7[%c0_14, %c0_15] : memref<1x128xf32, #tpu.memory_space<vmem>>, vector<1x128xf32>
    %21 = vector.broadcast %20 : vector<1x128xf32> to vector<16x128xf32>
    %22 = arith.addf %19, %21 : vector<16x128xf32>
    %c0_16 = arith.constant 0 : index
    %c0_17 = arith.constant 0 : index
    %23 = vector.load %arg8[%c0_16, %c0_17] : memref<16x1xf32, #tpu.memory_space<vmem>>, vector<16x1xf32>
    %24 = vector.broadcast %23 : vector<16x1xf32> to vector<16x128xf32>
    %25 = arith.mulf %22, %24 : vector<16x128xf32>
    %c0_18 = arith.constant 0 : index
    %c0_19 = arith.constant 0 : index
    %26 = vector.load %arg9[%c0_18, %c0_19] : memref<16x128xf32, #tpu.memory_space<vmem>>, vector<16x128xf32>
    tpu.vector_store %arg9[%c0_18, %c0_19], %25 {strides = array<i32>} : memref<16x128xf32, #tpu.memory_space<vmem>>, vector<16x128xf32>,
    return
  }
  func.func @transform_0(%arg0: i32) -> (i32, i32) {
    %c0_i32 = arith.constant 0 : i32
    %c0_i32_0 = arith.constant 0 : i32
    return %arg0, %c0_i32 : i32, i32
  }
  func.func @transform_1(%arg0: i32) -> (i32, i32) {
    %c0_i32 = arith.constant 0 : i32
    %c0_i32_0 = arith.constant 0 : i32
    %c0_i32_1 = arith.constant 0 : i32
    return %c0_i32, %c0_i32_0 : i32, i32
  }
  func.func @transform_2(%arg0: i32) -> (i32, i32) {
    %c0_i32 = arith.constant 0 : i32
    %c0_i32_0 = arith.constant 0 : i32
    %c0_i32_1 = arith.constant 0 : i32
    return %c0_i32, %c0_i32_0 : i32, i32
  }
  func.func @transform_3(%arg0: i32) -> (i32, i32) {
    %c0_i32 = arith.constant 0 : i32
    %c0_i32_0 = arith.constant 0 : i32
    %c0_i32_1 = arith.constant 0 : i32
    return %c0_i32, %c0_i32_0 : i32, i32
  }
  func.func @transform_4(%arg0: i32) -> (i32, i32) {
    %c0_i32 = arith.constant 0 : i32
    %c0_i32_0 = arith.constant 0 : i32
    %c0_i32_1 = arith.constant 0 : i32
    return %c0_i32, %c0_i32_0 : i32, i32
  }
  func.func @transform_5(%arg0: i32) -> (i32, i32) {
    %c0_i32 = arith.constant 0 : i32
    %c0_i32_0 = arith.constant 0 : i32
    %c0_i32_1 = arith.constant 0 : i32
    return %c0_i32, %c0_i32_0 : i32, i32
  }
  func.func @transform_6(%arg0: i32) -> (i32, i32) {
    %c0_i32 = arith.constant 0 : i32
    %c0_i32_0 = arith.constant 0 : i32
    %c0_i32_1 = arith.constant 0 : i32
    return %c0_i32, %c0_i32_0 : i32, i32
  }
  func.func @transform_7(%arg0: i32) -> (i32, i32) {
    %c0_i32 = arith.constant 0 : i32
    %c0_i32_0 = arith.constant 0 : i32
    return %arg0, %c0_i32 : i32, i32
  }
  func.func @transform_8(%arg0: i32) -> (i32, i32) {
    %c0_i32 = arith.constant 0 : i32
    %c0_i32_0 = arith.constant 0 : i32
    return %arg0, %c0_i32 : i32, i32
  }
}

</mosaic_0001>

<bundles_post_ra>
// kernel: tpu_custom_call.1
= control target key start
LH: loop header
LB: loop body
LE: loop exit
PB: predicated region body
PF: predicated region fallthrough
CT: control target
= control target key end

     0   :  { %13 = vsyncpa [#allocation3], 0  ;;  %s522_s0 = inlined_call_operand.vmem [shape: f32[16,128], index: 0, kind: input, shape index: {}]   ;;  %s523_s1 = inlined_call_operand.hbm [shape: f32[128,128], index: 1, kind: input, shape index: {}]   ;;  %s524_s2 = inlined_call_operand.vmem [shape: f32[1,128], index: 2, kind: input, shape index: {}]   ;;  %s525_s3 = inlined_call_operand.hbm [shape: f32[128,128], index: 3, kind: input, shape index: {}]   ;;  %s526_s4 = inlined_call_operand.vmem [shape: f32[1,128], index: 4, kind: input, shape index: {}]   ;;  %s527_s5 = inlined_call_operand.hbm [shape: f32[128,128], index: 5, kind: input, shape index: {}]   ;;  %s528_s6 = inlined_call_operand.vmem [shape: f32[1,128], index: 6, kind: input, shape index: {}]   ;;  %s529_s7 = inlined_call_operand.vmem [shape: f32[16,1], index: 7, kind: input, shape index: {}]   ;;  %s530_s8 = inlined_call_operand.hbm [shape: f32[16,128], index: 8, kind: output, shape index: {}]  }
   0x1   :  { %14 = vsyncpa [#allocation6], 0 }
   0x2   :  { %15 = vsyncpa [#allocation4], 0  ;;  %s37_s29 = sshll.u32 %s525_s3, 4  ;;  %s425_s30 = smov [#allocation5]   ;;  %s38_s29 = int_to_ptr.hbm [resolvable:$true] %s37_s29 }
   0x3   :  { %s39_s9 = sshll.u32 %s425_s30, 4  ;;  %s22_s12 = sshll.u32 %s523_s1, 4  ;;  %s40_s9 = int_to_ptr.vmem [resolvable:$true] %s39_s9  ;;  %s23_s12 = int_to_ptr.hbm [resolvable:$true] %s22_s12 }
   0x4   :  { %s426_s13 = smov 128   ;;  %s427_s14 = smov 8  }
   0x5   :  { %45 = dma.hbm_to_vmem [thread:$0]  %s38_s29, 2048, %s40_s9, [#allocation6], %s426_s13, %s426_s13, %s427_s14  }
   0x6   :  { %s428_s15 = smov [#allocation2]   ;;  %s52_s3 = sshll.u32 %s527_s5, 4  ;;  %s53_s3 = int_to_ptr.hbm [resolvable:$true] %s52_s3 }
   0x7   :  { %s24_s16 = sshll.u32 %s428_s15, 4  ;;  %s429_s1 = smov [#allocation7]   ;;  %s25_s16 = int_to_ptr.vmem [resolvable:$true] %s24_s16 }
   0x8   :  { %30 = dma.hbm_to_vmem [thread:$0]  %s23_s12, 2048, %s25_s16, [#allocation3], %s426_s13, %s426_s13, %s427_s14  }
   0x9   :  { %s54_s19 = sshll.u32 %s429_s1, 4  ;;  %s55_s19 = int_to_ptr.vmem [resolvable:$true] %s54_s19 }
   0xa   :  { %60 = dma.hbm_to_vmem [thread:$0]  %s53_s3, 2048, %s55_s19, [#allocation6], %s426_s13, %s426_s13, %s427_s14  }
   0xb   :  { %419 = dma.done.wait [#allocation3], 2048  }
   0xc   :  { %420 = vsyncadd [#allocation3], 4294965248 }
   0xd   :  { %421 = dma.done.wait [#allocation6], 4096  }
   0xe   :  { %422 = vsyncadd [#allocation6], 4294963200  ;;  %v94_v0 = vld [vmem:[#allocation2 + $0x78] sm:$0xff]  ;;  %v93_v1 = vld [vmem:[#allocation2 + $0x70] sm:$0xff]  ;;  %v430_v60 = vmov 0   ;;  %s431_s29 = smov [#allocation8]  }
   0xf   :  { %99 = vmatpush.msra.mxu0 %v94_v0  ;;  %288 = vmatpush.msra.mxu3 %v94_v0  ;;  %v92_v2 = vld [vmem:[#allocation2 + $0x68] sm:$0xff]  ;;  %v91_v3 = vld [vmem:[#allocation2 + $0x60] sm:$0xff]  ;;  %v177_v4 = vld [vmem:[#allocation5 + $0x78] sm:$0xff]  ;;  %s270_s30 = sshll.u32 %s431_s29, 4  ;;  %s272_s11 = sshll.u32 %s530_s8, 4  ;;  %s271_s30 = int_to_ptr.vmem [resolvable:$true] %s270_s30  ;;  %s273_s11 = int_to_ptr.hbm [resolvable:$true] %s272_s11 }
  0x10   :  { %v176_v5 = vld [vmem:[#allocation5 + $0x70] sm:$0xff]  ;;  %v90_v6 = vld [vmem:[#allocation2 + $0x58] sm:$0xff]  ;;  %182 = vmatpush.msra.mxu1 %v177_v4  ;;  %v175_v7 = vld [vmem:[#allocation5 + $0x68] sm:$0xff]  ;;  %311 = vset.pattern.permute.xlu0 %v430_v60 }
  0x11   :  { %100 = vmatpush.msra.mxu0 %v93_v1  ;;  %289 = vmatpush.msra.mxu3 %v93_v1  ;;  %v89_v8 = vld [vmem:[#allocation2 + $0x50] sm:$0xff]  ;;  %v174_v9 = vld [vmem:[#allocation5 + $0x60] sm:$0xff]  ;;  %v88_v10 = vld [vmem:[#allocation2 + $0x48] sm:$0xff] }
  0x12   :  { %183 = vmatpush.msra.mxu1 %v176_v5  ;;  %v173_v11 = vld [vmem:[#allocation5 + $0x58] sm:$0xff]  ;;  %v87_v12 = vld [vmem:[#allocation2 + $0x40] sm:$0xff]  ;;  %v172_v13 = vld [vmem:[#allocation5 + $0x50] sm:$0xff] }
  0x13   :  { %101 = vmatpush.msra.mxu0 %v92_v2  ;;  %290 = vmatpush.msra.mxu3 %v92_v2  ;;  %v86_v14 = vld [vmem:[#allocation2 + $0x38] sm:$0xff]  ;;  %v171_v15 = vld [vmem:[#allocation5 + $0x48] sm:$0xff]  ;;  %v85_v16 = vld [vmem:[#allocation2 + $0x30] sm:$0xff] }
  0x14   :  { %184 = vmatpush.msra.mxu1 %v175_v7  ;;  %v170_v17 = vld [vmem:[#allocation5 + $0x40] sm:$0xff]  ;;  %v84_v18 = vld [vmem:[#allocation2 + $0x28] sm:$0xff]  ;;  %v169_v19 = vld [vmem:[#allocation5 + $0x38] sm:$0xff] }
  0x15   :  { %102 = vmatpush.msra.mxu0 %v91_v3  ;;  %291 = vmatpush.msra.mxu3 %v91_v3  ;;  %v83_v20 = vld [vmem:[#allocation2 + $0x20] sm:$0xff]  ;;  %v168_v21 = vld [vmem:[#allocation5 + $0x30] sm:$0xff]  ;;  %v82_v22 = vld [vmem:[#allocation2 + $0x18] sm:$0xff] }
  0x16   :  { %185 = vmatpush.msra.mxu1 %v174_v9  ;;  %v167_v23 = vld [vmem:[#allocation5 + $0x28] sm:$0xff]  ;;  %v81_v24 = vld [vmem:[#allocation2 + $0x10] sm:$0xff]  ;;  %v166_v25 = vld [vmem:[#allocation5 + $0x20] sm:$0xff] }
  0x17   :  { %103 = vmatpush.msra.mxu0 %v90_v6  ;;  %292 = vmatpush.msra.mxu3 %v90_v6  ;;  %v80_v26 = vld [vmem:[#allocation2 + $0x8] sm:$0xff]  ;;  %v165_v27 = vld [vmem:[#allocation5 + $0x18] sm:$0xff]  ;;  %v79_v28 = vld [vmem:[#allocation2] sm:$0xff] }
  0x18   :  { %186 = vmatpush.msra.mxu1 %v173_v11  ;;  %v77_v29 = vld [vmem:[%s522_s0] sm:$0xff]  ;;  %v78_v30 = vld [vmem:[%s522_s0 + $0x8] sm:$0xff]  ;;  %v164_v31 = vld [vmem:[#allocation5 + $0x10] sm:$0xff] }
  0x19   :  { %104 = vmatpush.msra.mxu0 %v89_v8  ;;  %293 = vmatpush.msra.mxu3 %v89_v8  ;;  %v163_v32 = vld [vmem:[#allocation5 + $0x8] sm:$0xff]  ;;  %v162_v33 = vld [vmem:[#allocation5] sm:$0xff]  ;;  %v222_v34 = vld [vmem:[#allocation7 + $0x78] sm:$0xff] }
  0x1a   :  { %187 = vmatpush.msra.mxu1 %v172_v13  ;;  %227 = vmatpush.msra.mxu2 %v222_v34  ;;  %v221_v35 = vld [vmem:[#allocation7 + $0x70] sm:$0xff]  ;;  %v220_v36 = vld [vmem:[#allocation7 + $0x68] sm:$0xff]  ;;  %v219_v37 = vld [vmem:[#allocation7 + $0x60] sm:$0xff] }
  0x1b   :  { %105 = vmatpush.msra.mxu0 %v88_v10  ;;  %294 = vmatpush.msra.mxu3 %v88_v10  ;;  %v218_v38 = vld [vmem:[#allocation7 + $0x58] sm:$0xff]  ;;  %v217_v39 = vld [vmem:[#allocation7 + $0x50] sm:$0xff]  ;;  %v216_v40 = vld [vmem:[#allocation7 + $0x48] sm:$0xff] }
  0x1c   :  { %188 = vmatpush.msra.mxu1 %v171_v15  ;;  %228 = vmatpush.msra.mxu2 %v221_v35  ;;  %v215_v41 = vld [vmem:[#allocation7 + $0x40] sm:$0xff]  ;;  %v214_v42 = vld [vmem:[#allocation7 + $0x38] sm:$0xff]  ;;  %v213_v43 = vld [vmem:[#allocation7 + $0x30] sm:$0xff] }
  0x1d   :  { %106 = vmatpush.msra.mxu0 %v87_v12  ;;  %295 = vmatpush.msra.mxu3 %v87_v12  ;;  %v212_v44 = vld [vmem:[#allocation7 + $0x28] sm:$0xff]  ;;  %v211_v45 = vld [vmem:[#allocation7 + $0x20] sm:$0xff]  ;;  %v210_v46 = vld [vmem:[#allocation7 + $0x18] sm:$0xff] }
  0x1e   :  { %189 = vmatpush.msra.mxu1 %v170_v17  ;;  %229 = vmatpush.msra.mxu2 %v220_v36  ;;  %v312_v47 = vld [vmem:[%s524_s2] ss:$0 sm:$0xff]  ;;  %v209_v48 = vld [vmem:[#allocation7 + $0x10] sm:$0xff]  ;;  %v208_v49 = vld [vmem:[#allocation7 + $0x8] sm:$0xff] }
  0x1f   :  { %107 = vmatpush.msra.mxu0 %v86_v14  ;;  %296 = vmatpush.msra.mxu3 %v86_v14  ;;  %v207_v52 = vld [vmem:[#allocation7] sm:$0xff]  ;;  %v251_v63 = vld [vmem:[%s529_s7 + $0x8] sm:$0xff] }
  0x20   :  { %190 = vmatpush.msra.mxu1 %v169_v19  ;;  %230 = vmatpush.msra.mxu2 %v219_v37  ;;  %v250_v58 = vld [vmem:[%s529_s7] sm:$0xff] }
  0x21   :  { %108 = vmatpush.msra.mxu0 %v85_v16  ;;  %297 = vmatpush.msra.mxu3 %v85_v16  ;;  %v313_v7 = vld [vmem:[%s526_s4] ss:$0 sm:$0xff] }
  0x22   :  { %191 = vmatpush.msra.mxu1 %v168_v21  ;;  %231 = vmatpush.msra.mxu2 %v218_v38 }
  0x23   :  { %109 = vmatpush.msra.mxu0 %v84_v18  ;;  %298 = vmatpush.msra.mxu3 %v84_v18 }
  0x24   :  { %192 = vmatpush.msra.mxu1 %v167_v23  ;;  %232 = vmatpush.msra.mxu2 %v217_v39 }
  0x25   :  { %110 = vmatpush.msra.mxu0 %v83_v20  ;;  %299 = vmatpush.msra.mxu3 %v83_v20 }
  0x26   :  { %193 = vmatpush.msra.mxu1 %v166_v25  ;;  %233 = vmatpush.msra.mxu2 %v216_v40 }
  0x27   :  { %111 = vmatpush.msra.mxu0 %v82_v22  ;;  %300 = vmatpush.msra.mxu3 %v82_v22 }
  0x28   :  { %194 = vmatpush.msra.mxu1 %v165_v27  ;;  %234 = vmatpush.msra.mxu2 %v215_v41 }
  0x29   :  { %112 = vmatpush.msra.mxu0 %v81_v24  ;;  %301 = vmatpush.msra.mxu3 %v81_v24 }
  0x2a   :  { %195 = vmatpush.msra.mxu1 %v164_v31  ;;  %235 = vmatpush.msra.mxu2 %v214_v42 }
  0x2b   :  { %113 = vmatpush.msra.mxu0 %v80_v26  ;;  %302 = vmatpush.msra.mxu3 %v80_v26 }
  0x2c   :  { %196 = vmatpush.msra.mxu1 %v163_v32  ;;  %236 = vmatpush.msra.mxu2 %v213_v43 }
  0x2d   :  { %114 = vmatpush.msra.mxu0 %v79_v28  ;;  %303 = vmatpush.msra.mxu3 %v79_v28 }
  0x2e   :  { %115 = vmatmul.f32.vlgmr.msra.gmra.mxu0 %v77_v29  ;;  %118 = vmatmul.f32.vlgmr.msra.gmra.mxu3 %v78_v30 }
  0x2f   :  { %197 = vmatpush.msra.mxu1 %v162_v33  ;;  %237 = vmatpush.msra.mxu2 %v212_v44 }
  0x30   :  { %198 = vmatmul.f32.vlgmr.msra.gmra.mxu1 %v77_v29  ;;  %254 = vperm.xlu0 %311, %v250_v58   ;;  %v314_v29 = vld [vmem:[%s528_s6] ss:$0 sm:$0xff] }
  0x31   :  { %238 = vmatpush.msra.mxu2 %v211_v45 }
  0x33   :  { %239 = vmatpush.msra.mxu2 %v210_v46 }
  0x35   :  { %240 = vmatpush.msra.mxu2 %v209_v48 }
  0x37   :  { %241 = vmatpush.msra.mxu2 %v208_v49 }
  0x38   :  { %201 = vmatmul.f32.gmra.mxu1 %v78_v30  ;;  %259 = vperm.xlu0 %311, %v251_v63  }
  0x39   :  { %242 = vmatpush.msra.mxu2 %v207_v52 }
  0xa2   :  { %v255_v30 = vpop.permute.xlu0 %254 }
  0xaa   :  { %v260_v36 = vpop.permute.xlu0 %259 }
  0xab   :  { %v116_v50 = vpop.f32.mrf.mxu0 }
  0xac   :  { %v117_v51 = vadd.f32 %v312_v47, %v116_v50 }
  0xad   :  { %v199_v4 = vpop.f32.mrf.mxu1 }
  0xae   :  { %v286_v53 = vmul.f32 -1.442695, %v117_v51  ;;  %v200_v14 = vadd.f32 %v313_v7, %v199_v4 }
  0xb0   :  { %315 = vpow2.f32 %v286_v53 }
  0xb1   :  { %v119_v54 = vpop.f32.mrf.mxu3 }
  0xb2   :  { %v120_v55 = vadd.f32 %v312_v47, %v119_v54 }
  0xb4   :  { %v287_v56 = vmul.f32 -1.442695, %v120_v55 }
  0xb5   :  { %v202_v23 = vpop.f32.mrf.mxu1 }
  0xb6   :  { %v316_v57 = vpop.eup %315  ;;  %317 = vpow2.f32 %v287_v56  ;;  %v203_v27 = vadd.f32 %v313_v7, %v202_v23 }
  0xb7   :  { %v128_v59 = vadd.f32 1.0, %v316_v57 }
  0xb9   :  { %319 = vrcp.f32 %v128_v59  ;;  %v141_v3 = vand.u32 2147483648, %v128_v59  ;;  %v139_v6 = vand.u32 2147483647, %v128_v59  ;;  %vm135_vm1 = vweird.f32 %v128_v59 }
  0xbb   :  { %v142_v11 = vor.u32 1.1754944e-38, %v141_v3  ;;  %vm140_vm3 = vcmp.eq.f32.partialorder %v139_v6, 8.507059e+37 }
  0xbc   :  { %v318_v61 = vpop.eup %317 }
  0xbd   :  { %v129_v62 = vadd.f32 1.0, %v318_v61 }
  0xbf   :  { %v320_v0 = vpop.eup %319  ;;  %321 = vrcp.f32 %v129_v62  ;;  %v156_v16 = vand.u32 2147483648, %v129_v62  ;;  %v154_v19 = vand.u32 2147483647, %v129_v62  ;;  %vm150_vm5 = vweird.f32 %v129_v62 }
  0xc0   :  { %v131_v1 = vmul.f32 %v320_v0, %v128_v59  ;;  %vm136_vm0 = vweird.f32 %v320_v0 }
  0xc1   :  { %vm137_vm2 = vmor %vm135_vm1, %vm136_vm0  ;;  %v157_v22 = vor.u32 1.1754944e-38, %v156_v16  ;;  %vm155_vm7 = vcmp.eq.f32.partialorder %v154_v19, 8.507059e+37 }
  0xc2   :  { %v132_v2 = vsub.f32 1.0, %v131_v1 }
  0xc4   :  { %v133_v5 = vmul.f32 %v320_v0, %v132_v2 }
  0xc5   :  { %v322_v8 = vpop.eup %321 }
  0xc6   :  { %v134_v9 = vadd.f32 %v320_v0, %v133_v5  ;;  %v146_v10 = vmul.f32 %v322_v8, %v129_v62  ;;  %vm151_vm4 = vweird.f32 %v322_v8 }
  0xc7   :  { %vm152_vm6 = vmor %vm150_vm5, %vm151_vm4 }
  0xc8   :  { %v138_v12 = vsel %vm137_vm2, %v320_v0, %v134_v9  ;;  %v147_v13 = vsub.f32 1.0, %v146_v10 }
  0xc9   :  { %v143_v15 = vsel %vm140_vm3, %v142_v11, %v138_v12 }
  0xca   :  { %v160_v17 = vmul.f32 %v143_v15, %v117_v51  ;;  %v148_v18 = vmul.f32 %v322_v8, %v147_v13 }
  0xcc   :  { %v149_v20 = vadd.f32 %v322_v8, %v148_v18  ;;  %v205_v21 = vmul.f32 %v200_v14, %v160_v17 }
  0xce   :  { %v153_v24 = vsel %vm152_vm6, %v322_v8, %v149_v20  ;;  %243 = vmatmul.f32.vlgmr.msra.gmra.mxu2 %v205_v21 }
  0xcf   :  { %v158_v25 = vsel %vm155_vm7, %v157_v22, %v153_v24 }
  0xd0   :  { %v161_v26 = vmul.f32 %v158_v25, %v120_v55 }
  0xd2   :  { %v206_v28 = vmul.f32 %v203_v27, %v161_v26 }
  0xd6   :  { %246 = vmatmul.f32.gmra.mxu2 %v206_v28 }
 0x151   :  { %v244_v31 = vpop.f32.mrf.mxu2 }
 0x152   :  { %v245_v32 = vadd.f32 %v314_v29, %v244_v31 }
 0x154   :  { %v262_v33 = vmul.f32 %v255_v30, %v245_v32 }
 0x156   :  { %264 = vst [vmem:[#allocation8] sm:$0xff] %v262_v33 }
 0x159   :  { %v247_v34 = vpop.f32.mrf.mxu2 }
 0x15a   :  { %v248_v35 = vadd.f32 %v314_v29, %v247_v34 }
 0x15c   :  { %v263_v37 = vmul.f32 %v260_v36, %v248_v35 }
 0x15e   :  { %265 = vst [vmem:[#allocation8 + $0x8] sm:$0xff] %v263_v37 }
 0x15f   :  { %278 = dma.vmem_to_hbm [thread:$0]  %s271_s30, 256, %s273_s11, [#allocation4], %s426_s13, %s426_s13, %s427_s14  }
 0x160   :  { %423 = dma.done.wait [#allocation4], 256  }
 0x161   :  { %424 = vsyncadd [#allocation4], 4294967040 }
 0x162   :  { %283 = vsyncpa [#allocation3], 1 }
 0x163   :  { %284 = vsyncpa [#allocation6], 1 }
 0x164   :  { %285 = vsyncpa [#allocation4], 1 }

</bundles_post_ra>
